<compile_context>
chip_gen: v7x
topology: tpu7x:2x2x1
jax: 0.10.0
libtpu: 0.0.40
codegen_flags: <defaults>
</compile_context>

<pallas_src>
import jax
import jax.numpy as jnp
from jax import lax
from jax.experimental import pallas as pl
from jax.experimental.pallas import tpu as pltpu


def _fusion_scorer_kernel(x_ref, w_ref, b_ref, o_ref):
    # x_ref: (TM, H) row-tile of fused features (streamed, double-buffered)
    # w_ref: (1, H)  linear weight (constant index_map -> fetched once, resident)
    # b_ref: (1, 1)  linear bias   (resident)
    # o_ref: (1, TM) per-row scores, lane-dense along TM
    #
    # w (1,H) contracted with x (TM,H) over H -> (1, TM).  Both contracting dims
    # are minor (same MXU pattern as q @ k^T), so the result is produced directly
    # in the lane-dense layout needed for unmasked full-width stores.  Each output
    # lane depends only on its own input row, so ragged (partial) last blocks are
    # safe: garbage rows only affect lanes that Pallas masks off on store.
    score = lax.dot_general(
        w_ref[...], x_ref[...],
        dimension_numbers=(((1,), (1,)), ((), ())),
        preferred_element_type=jnp.float32,
    )
    o_ref[...] = (score + b_ref[0, 0]).astype(o_ref.dtype)


def _pick_tile_m(n_rows, hidden, x_block_vmem_bytes=8 << 20):
    """Pick a row-tile so one double-buffered x block stays well under the
    (conservative, v7x-safe) 32 MiB scoped-VMEM budget.  Accounts for the lane
    padding of the last dim (H < 128 still occupies 128 lanes in VMEM).  If the
    whole slab fits in one block, use the full extent (no alignment needed)."""
    lanes = ((hidden + 127) // 128) * 128
    rows = (x_block_vmem_bytes // (lanes * 4)) // 128 * 128
    rows = max(rows, 128)
    if n_rows <= rows:
        return int(n_rows)          # single full-extent block
    return int(rows)                # multiple of 128, >= 128


def fusion_scorer_forward(fused_h, weight, bias, *, tile_m=None, use_pallas=None):
    """Pallas equivalent of: nn.Linear(hidden_dim, 1)(fused_h).squeeze(-1).

    fused_h: (..., H) float
    weight : (1, H) or (H,) float
    bias   : (1,) or scalar float
    returns: (...)  same dtype as fused_h
    """
    orig_shape = fused_h.shape
    H = orig_shape[-1]
    x = fused_h.reshape(-1, H)
    N = x.shape[0]
    out_dtype = fused_h.dtype

    w = jnp.asarray(weight).reshape(1, H)
    b = jnp.asarray(bias).reshape(1, 1)

    if use_pallas is None:
        # µs-scale pallas_call launch/pipeline overhead dwarfs tiny problems;
        # below ~256 KiB let XLA fuse the matvec directly.
        use_pallas = N * H * x.dtype.itemsize >= (256 << 10)
    if not use_pallas:
        return (x @ w[0] + b[0, 0]).astype(out_dtype).reshape(orig_shape[:-1])

    if tile_m is None:
        tile_m = _pick_tile_m(N, H)
    else:
        tile_m = int(tile_m)
        if tile_m >= N:
            tile_m = N                                  # full-extent single block
        else:
            tile_m = max(128, (tile_m // 128) * 128)    # keep (8,128) alignment
    num_tiles = (N + tile_m - 1) // tile_m

    # NOTE: for H < 128 a further win is lane-packing (128 // H logical rows per
    # vreg row) so VMEM isn't lane-padded; skipped since the HBM DMA is already
    # contiguous full rows and the kernel is HBM-bandwidth bound.
    out = pl.pallas_call(
        _fusion_scorer_kernel,
        out_shape=jax.ShapeDtypeStruct((1, N), out_dtype),
        grid_spec=pltpu.PrefetchScalarGridSpec(
            num_scalar_prefetch=0,
            grid=(num_tiles,),
            in_specs=[
                pl.BlockSpec((tile_m, H), lambda i: (i, 0)),  # streamed x row-tile
                pl.BlockSpec((1, H), lambda i: (0, 0)),       # weight (resident)
                pl.BlockSpec((1, 1), lambda i: (0, 0)),       # bias   (resident)
            ],
            out_specs=pl.BlockSpec((1, tile_m), lambda i: (0, i)),  # lane-dense row
        ),
        compiler_params=pltpu.CompilerParams(
            dimension_semantics=("parallel",),       # lets v7x shard row-tiles across 2 TCs
            vmem_limit_bytes=32 * 1024 * 1024,       # raises v5e's 16 MiB default
        ),
        cost_estimate=pl.CostEstimate(
            flops=2 * N * H,
            transcendentals=0,
            bytes_accessed=4 * (N * H + N + H + 1),
        ),
    )(x, w, b)

    return out.reshape(orig_shape[:-1])


if __name__ == "__main__":
    # Small shapes implied by the module: (batch, seq, hidden_dim)
    B, S, H = 2, 8, 32

    key = jax.random.PRNGKey(0)
    k_x, k_w, k_b = jax.random.split(key, 3)

    fused_h = jax.random.normal(k_x, (B, S, H), dtype=jnp.float32)

    # Deterministic parameter init (nn.Linear(hidden_dim, 1): weight (1, H), bias (1,))
    bound = 1.0 / (H ** 0.5)
    weight = jax.random.uniform(k_w, (1, H), minval=-bound, maxval=bound,
                                dtype=jnp.float32)
    bias = jax.random.uniform(k_b, (1,), minval=-bound, maxval=bound,
                              dtype=jnp.float32)

    ref = fused_h @ weight[0] + bias[0]  # (B, S) pure-JAX reference

    # 1) Force the Pallas path at the demo shape (auto-dispatch would route this
    #    tiny input to plain XLA).  Single full-extent block.
    score = fusion_scorer_forward(fused_h, weight, bias, use_pallas=True)
    score = jax.block_until_ready(score)
    assert score.shape == (B, S)
    assert jnp.allclose(score, ref, atol=1e-5, rtol=1e-5)

    # 2) Exercise a multi-tile grid + ragged (non-divisible) tail with a small
    #    forced tile: N = 3*50 = 150 rows, tile_m = 128 -> 2 blocks, last partial.
    B2, S2, H2 = 3, 50, 64
    fh2 = jax.random.normal(k_x, (B2, S2, H2), dtype=jnp.float32)
    w2 = jax.random.uniform(k_w, (1, H2), minval=-1.0, maxval=1.0,
                            dtype=jnp.float32) / (H2 ** 0.5)
    b2 = jax.random.uniform(k_b, (1,), minval=-0.1, maxval=0.1, dtype=jnp.float32)
    out2 = jax.block_until_ready(
        fusion_scorer_forward(fh2, w2, b2, tile_m=128, use_pallas=True))
    ref2 = fh2 @ w2[0] + b2[0]
    assert out2.shape == (B2, S2)
    assert jnp.allclose(out2, ref2, atol=1e-5, rtol=1e-5)

    # 3) Auto-dispatch path (tiny input -> fused XLA matvec), same numerics.
    auto = jax.block_until_ready(fusion_scorer_forward(fused_h, weight, bias))
    assert jnp.allclose(auto, ref, atol=1e-5, rtol=1e-5)

    print("KERNEL_OK")
</pallas_src>

<mosaic_0001>
module attributes {stable_mosaic.version = 11 : i64} {
  func.func @_fusion_scorer_kernel(%arg0: i32, %arg1: memref<16x32xf32, #tpu.memory_space<vmem>>, %arg2: memref<1x32xf32, #tpu.memory_space<vmem>>, %arg3: memref<1x1xf32, #tpu.memory_space<vmem>>, %arg4: memref<1x16xf32, #tpu.memory_space<vmem>>) attributes {dimension_semantics = [#tpu.dimension_semantics<parallel>], iteration_bounds = array<i64: 1>, scalar_prefetch = 0 : i64, scratch_operands = 0 : i64, tpu.core_type = #tpu.core_type<tc>, window_params = [{transform_indices = @transform_0, window_bounds = array<i64: 16, 32>}, {pipeline_mode = #tpu.pipeline_mode<synchronous>, transform_indices = @transform_1, window_bounds = array<i64: 1, 32>}, {pipeline_mode = #tpu.pipeline_mode<synchronous>, transform_indices = @transform_2, window_bounds = array<i64: 1, 1>}, {transform_indices = @transform_3, window_bounds = array<i64: 1, 16>}]} {
    %c0 = arith.constant 0 : index
    %c0_0 = arith.constant 0 : index
    %0 = vector.load %arg2[%c0, %c0_0] : memref<1x32xf32, #tpu.memory_space<vmem>>, vector<1x32xf32>
    %c0_1 = arith.constant 0 : index
    %c0_2 = arith.constant 0 : index
    %1 = vector.load %arg1[%c0_1, %c0_2] : memref<16x32xf32, #tpu.memory_space<vmem>>, vector<16x32xf32>
    %cst = arith.constant dense<0.000000e+00> : vector<1x16xf32>
    %2 = tpu.matmul %0, %1, %cst {dimension_numbers = #tpu.dot_dimension_numbers<[1], [1], [0], [0], [0, 0, 1, 0], [], []>} : vector<1x32xf32>, vector<16x32xf32>, vector<1x16xf32> -> vector<1x16xf32>
    %c0_3 = arith.constant 0 : index
    %c0_4 = arith.constant 0 : index
    %3 = vector.load %arg3[%c0_3, %c0_4] : memref<1x1xf32, #tpu.memory_space<vmem>>, vector<1x1xf32>
    %4 = vector.extract %3[0, 0] : f32 from vector<1x1xf32>
    %5 = vector.broadcast %4 : f32 to vector<1x16xf32>
    %6 = arith.addf %2, %5 : vector<1x16xf32>
    %c0_5 = arith.constant 0 : index
    %c0_6 = arith.constant 0 : index
    %7 = vector.load %arg4[%c0_5, %c0_6] : memref<1x16xf32, #tpu.memory_space<vmem>>, vector<1x16xf32>
    tpu.vector_store %arg4[%c0_5, %c0_6], %6 {strides = array<i32>} : memref<1x16xf32, #tpu.memory_space<vmem>>, vector<1x16xf32>,
    return
  }
  func.func @transform_0(%arg0: i32) -> (i32, i32) {
    %c0_i32 = arith.constant 0 : i32
    %c0_i32_0 = arith.constant 0 : i32
    return %arg0, %c0_i32 : i32, i32
  }
  func.func @transform_1(%arg0: i32) -> (i32, i32) {
    %c0_i32 = arith.constant 0 : i32
    %c0_i32_0 = arith.constant 0 : i32
    %c0_i32_1 = arith.constant 0 : i32
    return %c0_i32, %c0_i32_0 : i32, i32
  }
  func.func @transform_2(%arg0: i32) -> (i32, i32) {
    %c0_i32 = arith.constant 0 : i32
    %c0_i32_0 = arith.constant 0 : i32
    %c0_i32_1 = arith.constant 0 : i32
    return %c0_i32, %c0_i32_0 : i32, i32
  }
  func.func @transform_3(%arg0: i32) -> (i32, i32) {
    %c0_i32 = arith.constant 0 : i32
    %c0_i32_0 = arith.constant 0 : i32
    return %c0_i32, %arg0 : i32, i32
  }
}

</mosaic_0001>

<bundles_post_ra>
// kernel: tpu_custom_call.1
= control target key start
LH: loop header
LB: loop body
LE: loop exit
PB: predicated region body
PF: predicated region fallthrough
CT: control target
= control target key end

     0   :  { %s265_s0 = inlined_call_operand.hbm [shape: f32[16,32], index: 0, kind: input, shape index: {}]   ;;  %s266_s1 = inlined_call_operand.vmem [shape: f32[1,32], index: 1, kind: input, shape index: {}]   ;;  %s267_s2 = inlined_call_operand.<no memory space> [shape: f32[1,1], index: 2, kind: input, shape index: {}]   ;;  %s268_s3 = inlined_call_operand.hbm [shape: f32[1,16], index: 3, kind: output, shape index: {}]  }
   0x1   :  { %v8_v0 = vstv %s267_s2 }
   0x2   :  { %9 = vst [vmem:[#allocation2] sm:$0x1] %v8_v0 }
   0x3   :  { %10 = vsyncpa [#allocation4], 0 }
   0x4   :  { %11 = vsyncpa [#allocation5], 0  ;;  %s208_s14 = smov [#allocation3]   ;;  %s160_s18 = scalar_lea.hbm %s265_s0, 256 }
   0x5   :  { %s17_s15 = sshll.u32 %s208_s14, 4  ;;  %p161_p0 = scmp.ne.s32.totalorder %s265_s0, %s160_s18  ;;  %s18_s15 = int_to_ptr.vmem [resolvable:$true] %s17_s15 }
   0x6   :  { %p164_p1 = scmp.lt.u32.totalorder %s160_s18, %s265_s0 }
   0x8   :  { %p166_p2 = pnand %p164_p1, %p161_p0 }
   0xa   :  { %169 = shalt.err (!%p166_p2)
}
   0xb   :  { %s170_s2 = scalar_lea.vmem %s18_s15, 256  ;;  %p175_p4 = scmp.lt.s32.totalorder %s18_s15, %s18_s15 }
   0xc   :  { %p171_p3 = scmp.ne.s32.totalorder %s18_s15, %s170_s2  ;;  %p176_p5 = scmp.lt.s32.totalorder %s170_s2, %s170_s2 }
   0xe   :  { %p177_p6 = por %p176_p5, %p175_p4 }
  0x10   :  { %p178_p7 = pnand %p177_p6, %p171_p3 }
  0x12   :  { %181 = shalt.err (!%p178_p7)
}
  0x13   :  { %s209_s23 = smov 128   ;;  %s210_s24 = smov 8  }
  0x14   :  { %23 = dma.hbm_to_vmem [thread:$0]  %s265_s0, 256, %s18_s15, [#allocation4], %s209_s23, %s209_s23, %s210_s24  }
  0x15   :  { %204 = dma.done.wait [#allocation4], 256  }
  0x16   :  { %205 = vsyncadd [#allocation4], 4294967040  ;;  %v211_v1 = vmov 0.0|0.0   ;;  %vm212_vm0 = vmmov 0   ;;  %v213_v2 = vmov 0.0   ;;  %vm37_vm1 = vcmask 261120  }
  0x17   :  { %147 = vmatprep.subr.bf16.mxu0 %v211_v1  ;;  %144 = vmatprep.mubr.msk.f32.mxu0 %vm212_vm0, %v213_v2  ;;  %v32_v3 = vld [vmem:[#allocation3] sm:$0xff]  ;;  %v33_v4 = vld [vmem:[#allocation3 + $0x8] sm:$0xff]  ;;  %vm149_vm2 = vmpackc.low %vm37_vm1, %vm37_vm1  ;;  %s214_s29 = smov [#allocation6]   ;;  %vm117_vm3 = vcmask 122880  }
  0x18   :  { %v148_v5 = vpack.c.bf16 %v33_v4, %v32_v3  ;;  %v34_v6 = vld [vmem:[#allocation2] sm:$0x1]  ;;  %s125_s30 = sshll.u32 %s214_s29, 4  ;;  %s126_s30 = int_to_ptr.vmem [resolvable:$true] %s125_s30 }
  0x19   :  { %151 = vpush %v34_v6  ;;  %v31_v7 = vld [vmem:[%s266_s1] sm:$0x1]  ;;  %s182_s4 = scalar_lea.vmem %s126_s30, 16  ;;  %s186_s5 = scalar_lea.vmem %s126_s30, 32 }
  0x1a   :  { %150 = vmatpush3.bf16.xpose.msk.msra.mxu0 %vm149_vm2, %v148_v5  ;;  %p183_p8 = scmp.ne.s32.totalorder %s126_s30, %s182_s4  ;;  %p187_p9 = scmp.lt.s32.totalorder %s126_s30, %s126_s30 }
  0x1b   :  { %p188_p10 = scmp.lt.s32.totalorder %s186_s5, %s182_s4 }
  0x1d   :  { %p189_p11 = por %p188_p10, %p187_p9 }
  0x1f   :  { %p190_p12 = pnand %p189_p11, %p183_p8 }
  0x21   :  { %145 = vmatmul.mubr.msk.f32.vlgmr.msra.gmra.mrb[0].mxu0 %vm37_vm1, %v31_v7 }
  0x4a   :  { %s152_s0 = spop %151 }
  0x4b   :  { %v36_v8 = vstv %s152_s0 }
  0xf4   :  { %v113_v9 = vpop.f32.mrb[0].mxu0 }
  0xf5   :  { %v114_v10 = vadd.f32 %v113_v9, %v36_v8  ;;  %v146_v11 = vpop.f32.mrb[1].mxu0 }
  0xf7   :  { %118 = vst.msk [vmem:[#allocation6] sm:$0x1] %vm117_vm3, %v114_v10 }
  0xf8   :  { %193 = shalt.err (!%p190_p12)
}
  0xf9   :  { %s194_s7 = scalar_lea.hbm %s268_s3, 16 }
  0xfa   :  { %p195_p13 = scmp.ne.s32.totalorder %s268_s3, %s194_s7  ;;  %p198_p0 = scmp.lt.u32.totalorder %s194_s7, %s268_s3 }
  0xfc   :  { %p200_p1 = pnand %p198_p0, %p195_p13 }
  0xfe   :  { %203 = shalt.err (!%p200_p1)
}
  0xff   :  { %128 = dma.vmem_to_hbm [thread:$0]  %s126_s30, 16, %s268_s3, [#allocation5]  }
 0x100   :  { %206 = dma.done.wait [#allocation5], 16  }
 0x101   :  { %207 = vsyncadd [#allocation5], 4294967280 }
 0x102   :  { %132 = vsyncpa [#allocation4], 1 }
 0x103   :  { %133 = vsyncpa [#allocation5], 1 }

</bundles_post_ra>
